<compile_context>
chip_gen: v5e
topology: v5e:2x2
jax: 0.10.0
libtpu: 0.0.40
codegen_flags: <defaults>
</compile_context>

<pallas_src>
import functools

import jax
import jax.numpy as jnp
from jax.experimental import pallas as pl
from jax.experimental.pallas import tpu as pltpu


def _pad_kernel(x_ref, o_ref, *, left, right):
    """Writes one (tm, left + W + right) output tile.

    `left` / `right` are static Python ints, so every slice below is static
    and lowers to plain (possibly masked) vector stores — no dynamic indexing.
    Only the pad strips are zeroed; the interior is written exactly once.
    """
    rows, w_in = x_ref.shape
    if left:
        o_ref[:, :left] = jnp.zeros((rows, left), o_ref.dtype)
    if right:
        o_ref[:, left + w_in:] = jnp.zeros((rows, right), o_ref.dtype)
    o_ref[:, left:left + w_in] = x_ref[...]


def _choose_row_tile(m, bytes_per_row, target_rows, vmem_budget_bytes):
    """Pick a row-tile size: big (amortize per-step overhead), VMEM-safe."""
    # Cap so the double-buffered (in + out) tiles stay within the budget.
    cap = max(8, vmem_budget_bytes // max(bytes_per_row, 1))
    cap = max(8, (cap // 8) * 8)
    target = max(8, min(target_rows, cap))
    target -= target % 8

    if m <= target:
        return m, m  # single full-extent block (always a legal block shape)

    # Prefer a multiple of 8 that divides M -> every DMA is full-sized.
    for cand in range(target, 7, -8):
        if m % cand == 0:
            return cand, pl.cdiv(m, cand)

    if m % 8 != 0:
        # No clean divisor and M itself isn't 8-aligned: a single full-extent
        # block is the always-legal fallback.
        return m, 1

    # 8-aligned M with no nice divisor: tile anyway; the last (partial) block
    # is handled by Pallas' masked DMAs.
    return target, pl.cdiv(m, target)


def pad_last_dim(x, pad, *, row_tile=512, vmem_budget_bytes=8 * 1024 * 1024):
    """Pallas equivalent of torch.nn.functional.pad(x, (l, r), 'constant', 0)."""
    if isinstance(pad, tuple):
        left, right = pad
    else:
        left = right = pad
    assert left >= 0 and right >= 0, "only non-negative constant padding supported"

    if left == 0 and right == 0:
        return x

    orig_shape = x.shape
    w_in = orig_shape[-1]
    w_out = w_in + left + right

    m = 1
    for d in orig_shape[:-1]:
        m *= d
    x2d = x.reshape(m, w_in)

    itemsize = jnp.dtype(x.dtype).itemsize
    # in-tile + out-tile, each double-buffered by the pipeline.
    bytes_per_row = (w_in + w_out) * itemsize * 2
    tm, grid_rows = _choose_row_tile(m, bytes_per_row, row_tile,
                                     vmem_budget_bytes)

    bytes_accessed = (m * w_in + m * w_out) * itemsize
    kernel = functools.partial(_pad_kernel, left=left, right=right)

    out2d = pl.pallas_call(
        kernel,
        out_shape=jax.ShapeDtypeStruct((m, w_out), x.dtype),
        grid_spec=pltpu.PrefetchScalarGridSpec(
            num_scalar_prefetch=0,
            grid=(grid_rows,),
            in_specs=[pl.BlockSpec((tm, w_in), lambda i: (i, 0))],
            out_specs=pl.BlockSpec((tm, w_out), lambda i: (i, 0)),
        ),
        compiler_params=pltpu.CompilerParams(
            dimension_semantics=("parallel",),
        ),
        cost_estimate=pl.CostEstimate(
            flops=0, transcendentals=0, bytes_accessed=bytes_accessed),
    )(x2d)

    return out2d.reshape(*orig_shape[:-1], w_out)


class Padding:
    """JAX/Pallas mirror of the PyTorch Padding module."""

    def __init__(self, pad, row_tile=512):
        if isinstance(pad, tuple):
            self.left_pad, self.right_pad = pad
        else:
            self.left_pad = pad
            self.right_pad = pad
        self.row_tile = row_tile

    def __call__(self, x):
        return pad_last_dim(x, (self.left_pad, self.right_pad),
                            row_tile=self.row_tile)


if __name__ == "__main__":
    # Small shapes: batch=2, channels=4, height=16, width=16; pad last dim.
    batch, channels, height, width = 2, 4, 16, 16
    left_pad, right_pad = 3, 5

    key = jax.random.PRNGKey(0)
    x = jax.random.normal(key, (batch, channels, height, width),
                          dtype=jnp.float32)

    # Tuple-pad form; row_tile=64 so the small demo still exercises a
    # multi-step pipelined grid (M = 128 rows -> 2 tiles of 64).
    module = Padding((left_pad, right_pad), row_tile=64)
    out = module(x)
    jax.block_until_ready(out)

    ref = jnp.pad(x, ((0, 0), (0, 0), (0, 0), (left_pad, right_pad)),
                  mode="constant", constant_values=0.0)
    assert out.shape == (batch, channels, height, width + left_pad + right_pad)
    assert out.shape == ref.shape
    assert jnp.array_equal(out, ref)

    # Scalar-pad constructor form: Padding(2) -> pad (2, 2).  Default row_tile
    # exercises the single-block (full-array) path.
    module2 = Padding(2)
    out2 = module2(x)
    jax.block_until_ready(out2)
    ref2 = jnp.pad(x, ((0, 0), (0, 0), (0, 0), (2, 2)),
                   mode="constant", constant_values=0.0)
    assert jnp.array_equal(out2, ref2)

    # One-sided pad (left only) to exercise the trace-time strip elision.
    out3 = Padding((0, 4))(x)
    jax.block_until_ready(out3)
    ref3 = jnp.pad(x, ((0, 0), (0, 0), (0, 0), (0, 4)),
                   mode="constant", constant_values=0.0)
    assert jnp.array_equal(out3, ref3)

    print("KERNEL_OK")
</pallas_src>

<mosaic_0001>
module attributes {stable_mosaic.version = 11 : i64} {
  func.func @_pad_kernel(%arg0: i32, %arg1: memref<64x16xf32, #tpu.memory_space<vmem>>, %arg2: memref<64x24xf32, #tpu.memory_space<vmem>>) attributes {dimension_semantics = [#tpu.dimension_semantics<parallel>], iteration_bounds = array<i64: 2>, scalar_prefetch = 0 : i64, scratch_operands = 0 : i64, tpu.core_type = #tpu.core_type<tc>, window_params = [{transform_indices = @transform_0, window_bounds = array<i64: 64, 16>}, {transform_indices = @transform_1, window_bounds = array<i64: 64, 24>}]} {
    %cst = arith.constant 0.000000e+00 : f32
    %0 = vector.broadcast %cst : f32 to vector<64x3xf32>
    %c0 = arith.constant 0 : index
    %c0_0 = arith.constant 0 : index
    %1 = vector.load %arg2[%c0, %c0_0] : memref<64x24xf32, #tpu.memory_space<vmem>>, vector<64x3xf32>
    tpu.vector_store %arg2[%c0, %c0_0], %0 {strides = array<i32>} : memref<64x24xf32, #tpu.memory_space<vmem>>, vector<64x3xf32>,
    %cst_1 = arith.constant 0.000000e+00 : f32
    %2 = vector.broadcast %cst_1 : f32 to vector<64x5xf32>
    %c0_2 = arith.constant 0 : index
    %c19 = arith.constant 19 : index
    %3 = vector.load %arg2[%c0_2, %c19] : memref<64x24xf32, #tpu.memory_space<vmem>>, vector<64x5xf32>
    tpu.vector_store %arg2[%c0_2, %c19], %2 {strides = array<i32>} : memref<64x24xf32, #tpu.memory_space<vmem>>, vector<64x5xf32>,
    %c0_3 = arith.constant 0 : index
    %c0_4 = arith.constant 0 : index
    %4 = vector.load %arg1[%c0_3, %c0_4] : memref<64x16xf32, #tpu.memory_space<vmem>>, vector<64x16xf32>
    %c0_5 = arith.constant 0 : index
    %c3 = arith.constant 3 : index
    %5 = vector.load %arg2[%c0_5, %c3] : memref<64x24xf32, #tpu.memory_space<vmem>>, vector<64x16xf32>
    tpu.vector_store %arg2[%c0_5, %c3], %4 {strides = array<i32>} : memref<64x24xf32, #tpu.memory_space<vmem>>, vector<64x16xf32>,
    return
  }
  func.func @transform_0(%arg0: i32) -> (i32, i32) {
    %c0_i32 = arith.constant 0 : i32
    %c0_i32_0 = arith.constant 0 : i32
    return %arg0, %c0_i32 : i32, i32
  }
  func.func @transform_1(%arg0: i32) -> (i32, i32) {
    %c0_i32 = arith.constant 0 : i32
    %c0_i32_0 = arith.constant 0 : i32
    return %arg0, %c0_i32 : i32, i32
  }
}

</mosaic_0001>

<bundles_post_ra>
// kernel: tpu_custom_call.1
= control target key start
LH: loop header
LB: loop body
LE: loop exit
PB: predicated region body
PF: predicated region fallthrough
CT: control target
= control target key end

     0   :  { %s284_s6 = smov 0   ;;  %s361_s0 = inlined_call_operand.vmem [shape: f32[128,16], index: 0, kind: input, shape index: {}]   ;;  %s362_s1 = inlined_call_operand.vmem [shape: f32[128,24], index: 1, kind: output, shape index: {}]  }
   0x1 LB: > { %s243_s7 = sadd.s32 4294967295, %s270_s6   ;;  %p247_p0 = scmp.ge.s32.totalorder %s270_s6, 1  ;;  %s270_s6 = sphi %s284_s6, %s11_s6  }
   0x2   : > { %p88_p1 = scmp.lt.s32.totalorder %s270_s6, 3 }
   0x4   : > { %p89_p2 = pnand %p247_p0, %p88_p1 }
   0x5   : > { %s248_s8 = sshll.u32 (!%p89_p2), %s243_s7, 3  ;;  %s273_s16 = smov (!%p89_p2), 3  }
   0x6   : > { %92 = sbr.rel (%p89_p2) target bundleno = 148 (0x94), region = 24  ;;  %p109_p3 = scmp.lt.s32.totalorder (!%p89_p2), %s248_s8, 15 }
   0xb   : > { %s364_s8 = smov (!%p109_p3, %s248_s8), 15  ;;  %vm120_vm0 = vcmask 23552   ;;  %vm129_vm1 = vcmask 195736   ;;  %v272_v2 = vmov 0.0   ;;  %vm178_vm2 = vcmask 154648  }
   0xc   : > { %s249_s9 = sshll.u32 %s364_s8, 3 }
   0xd   : > { %s295_s12 = scalar_lea.vmem %s361_s0, %s249_s9  ;;  %s300_s15 = scalar_lea.vmem %s362_s1, %s249_s9 }
   0xe   : > { %v140_v0 = vld [vmem:[%s295_s12 + $0x10] sm:$0xff]  ;;  %v138_v1 = vld [vmem:[%s295_s12] sm:$0xff]  ;;  %123 = vst.msk [vmem:[%s300_s15 + $0x10] sm:$0xff] %vm120_vm0, %v272_v2  ;;  %v141_v4 = vld [vmem:[%s295_s12 + $0x18] sm:$0xff] }
   0xf   : > { %158 = vrot.lane.b32.xlu1 %v140_v0, %s273_s16  ;;  %154 = vrot.lane.b32.xlu0 %v138_v1, %s273_s16  ;;  %v142_v3 = vld [vmem:[%s295_s12 + $0x20] sm:$0xff]  ;;  %132 = vst.msk [vmem:[%s300_s15 + $0x10] sm:$0xff] %vm129_vm1, %v272_v2 }
  0x10   : > { %162 = vrot.lane.b32.xlu2 %v142_v3, %s273_s16  ;;  %121 = vst.msk [vmem:[%s300_s15] sm:$0xff] %vm120_vm0, %v272_v2  ;;  %v139_v5 = vld [vmem:[%s295_s12 + $0x8] sm:$0xff]  ;;  %v145_v7 = vld [vmem:[%s295_s12 + $0x38] sm:$0xff] }
  0x11   : > { %122 = vst.msk [vmem:[%s300_s15 + $0x8] sm:$0xff] %vm120_vm0, %v272_v2  ;;  %v143_v6 = vld [vmem:[%s295_s12 + $0x28] sm:$0xff]  ;;  %v144_v8 = vld [vmem:[%s295_s12 + $0x30] sm:$0xff] }
  0x12   : > { %124 = vst.msk [vmem:[%s300_s15 + $0x18] sm:$0xff] %vm120_vm0, %v272_v2 }
  0x13   : > { %125 = vst.msk [vmem:[%s300_s15 + $0x20] sm:$0xff] %vm120_vm0, %v272_v2 }
  0x14   : > { %126 = vst.msk [vmem:[%s300_s15 + $0x28] sm:$0xff] %vm120_vm0, %v272_v2 }
  0x15   : > { %127 = vst.msk [vmem:[%s300_s15 + $0x30] sm:$0xff] %vm120_vm0, %v272_v2 }
  0x16   : > { %128 = vst.msk [vmem:[%s300_s15 + $0x38] sm:$0xff] %vm120_vm0, %v272_v2 }
  0x17   : > { %160 = vrot.lane.b32.xlu1 %v141_v4, %s273_s16  ;;  %156 = vrot.lane.b32.xlu0 %v139_v5, %s273_s16  ;;  %130 = vst.msk [vmem:[%s300_s15] sm:$0xff] %vm129_vm1, %v272_v2 }
  0x18   : > { %164 = vrot.lane.b32.xlu2 %v143_v6, %s273_s16  ;;  %131 = vst.msk [vmem:[%s300_s15 + $0x8] sm:$0xff] %vm129_vm1, %v272_v2 }
  0x19   : > { %133 = vst.msk [vmem:[%s300_s15 + $0x18] sm:$0xff] %vm129_vm1, %v272_v2 }
  0x1a   : > { %134 = vst.msk [vmem:[%s300_s15 + $0x20] sm:$0xff] %vm129_vm1, %v272_v2 }
  0x1b   : > { %135 = vst.msk [vmem:[%s300_s15 + $0x28] sm:$0xff] %vm129_vm1, %v272_v2 }
  0x1c   : > { %136 = vst.msk [vmem:[%s300_s15 + $0x30] sm:$0xff] %vm129_vm1, %v272_v2 }
  0x1d   : > { %137 = vst.msk [vmem:[%s300_s15 + $0x38] sm:$0xff] %vm129_vm1, %v272_v2 }
  0x1f   : > { %168 = vrot.lane.b32.xlu1 %v145_v7, %s273_s16  ;;  %166 = vrot.lane.b32.xlu0 %v144_v8, %s273_s16 }
  0x6a   : > { %v163_v9 = vpop.permute.xlu2 %162 }
  0x6b   : > { %183 = vst.msk [vmem:[%s300_s15 + $0x20] sm:$0xff] %vm178_vm2, %v163_v9 }
  0x72   : > { %v165_v10 = vpop.permute.xlu2 %164 }
  0x73   : > { %184 = vst.msk [vmem:[%s300_s15 + $0x28] sm:$0xff] %vm178_vm2, %v165_v10 }
  0x81   : > { %v159_v11 = vpop.permute.xlu1 %158  ;;  %v155_v12 = vpop.permute.xlu0 %154 }
  0x82   : > { %181 = vst.msk [vmem:[%s300_s15 + $0x10] sm:$0xff] %vm178_vm2, %v159_v11 }
  0x83   : > { %179 = vst.msk [vmem:[%s300_s15] sm:$0xff] %vm178_vm2, %v155_v12 }
  0x89   : > { %v161_v13 = vpop.permute.xlu1 %160  ;;  %v157_v14 = vpop.permute.xlu0 %156 }
  0x8a   : > { %182 = vst.msk [vmem:[%s300_s15 + $0x18] sm:$0xff] %vm178_vm2, %v161_v13 }
  0x8b   : > { %180 = vst.msk [vmem:[%s300_s15 + $0x8] sm:$0xff] %vm178_vm2, %v157_v14 }
  0x91   : > { %v169_v15 = vpop.permute.xlu1 %168  ;;  %v167_v16 = vpop.permute.xlu0 %166 }
  0x92   : > { %186 = vst.msk [vmem:[%s300_s15 + $0x38] sm:$0xff] %vm178_vm2, %v169_v15 }
  0x93   : > { %185 = vst.msk [vmem:[%s300_s15 + $0x30] sm:$0xff] %vm178_vm2, %v167_v16 }
  0x94 PF: > { %s11_s6 = sadd.s32 1, %s270_s6  }
  0x95   : > { %p8_p4 = scmp.ge.s32.totalorder %s11_s6, 4  }
  0x97   :  { %10 = sbr.rel (!%p8_p4) target bundleno = 1 (0x1), region = 54 }

</bundles_post_ra>
